<compile_context>
chip_gen: v6e
topology: v6e:2x2x1
jax: 0.10.0
libtpu: 0.0.40
codegen_flags: <defaults>
</compile_context>

<pallas_src>
import jax
import jax.numpy as jnp
from jax.experimental import pallas as pl
from jax.experimental.pallas import tpu as pltpu

BN_EPS = 1e-5
HID1 = 128
HID2 = 64


def _mlp_kernel(x_ref, w1_ref, b1_ref, weff_ref, ceff_ref, o_ref):
    # fc1 on the MXU: (TILE_B, D_in) @ (D_in, 128) -> f32 accumulate
    h1 = jnp.dot(x_ref[...], w1_ref[...], preferred_element_type=jnp.float32)
    # bias + ReLU on the VPU
    h1 = jnp.maximum(h1 + b1_ref[...], 0.0)
    # Folded BN-affine + fc2 + fc3: VPU broadcast-multiply + XLU lane reduce
    # (replaces an N=1 MXU matmul), plus scalar bias from SMEM.
    y = jnp.sum(h1 * weff_ref[...], axis=-1) + ceff_ref[0, 0]      # (TILE_B,)
    # Lane-dense store: one (1, TILE_B) row per grid step.
    o_ref[...] = y[None, :]


def fold_params(params):
    """Fold BatchNorm affine + fc2 + fc3 into (w_eff, c_eff). Do once, not per call."""
    scale = params["bn_gamma"] * jax.lax.rsqrt(params["bn_var"] + BN_EPS)   # (1,128)
    shift = params["bn_beta"] - params["bn_mean"] * scale                   # (1,128)
    v = params["w2"] @ params["w3"]                                         # (128,1)
    w_eff = (scale.reshape(-1) * v.reshape(-1))[None, :]                    # (1,128)
    c_eff = (shift.reshape(-1) @ v.reshape(-1)
             + (params["b2"] @ params["w3"]).reshape(())
             + params["b3"].reshape(()))
    return {
        "w1": params["w1"].astype(jnp.float32),            # (D_in, 128)
        "b1": params["b1"].astype(jnp.float32),             # (1, 128)
        "w_eff": w_eff.astype(jnp.float32),                  # (1, 128)
        "c_eff": c_eff.reshape(1, 1).astype(jnp.float32),    # (1, 1) scalar -> SMEM
    }


def neural_network_forward(x, folded, *, tile_b=512):
    """x: (B, num_inputs) float32. Returns (B, 1) float32 (eval-mode forward)."""
    B, D = x.shape

    # Batch tile: multiple of 8 sublanes.  512 rows for large batches gives a
    # good HBM-roofline fraction and fits easily in scoped VMEM (v5e/v6e/v7x)
    # with double-buffering; for small B we shrink to the sublane-padded batch
    # so there is exactly one grid step and no extra padding work.
    TILE_B = min(tile_b, pl.cdiv(B, 8) * 8)
    padded_B = pl.cdiv(B, TILE_B) * TILE_B
    n_tiles = padded_B // TILE_B
    if padded_B != B:
        x = jnp.pad(x, ((0, padded_B - B), (0, 0)))

    out_row = pl.pallas_call(
        _mlp_kernel,
        out_shape=jax.ShapeDtypeStruct((1, padded_B), jnp.float32),
        grid=(n_tiles,),
        in_specs=[
            pl.BlockSpec((TILE_B, D), lambda i: (i, 0)),        # x tile (pipelined)
            pl.BlockSpec((D, HID1), lambda i: (0, 0)),          # w1 (VMEM resident)
            pl.BlockSpec((1, HID1), lambda i: (0, 0)),          # b1 (resident)
            pl.BlockSpec((1, HID1), lambda i: (0, 0)),          # folded head row
            pl.BlockSpec(memory_space=pltpu.MemorySpace.SMEM),  # c_eff scalar
        ],
        out_specs=pl.BlockSpec((1, TILE_B), lambda i: (0, i)),  # lane-dense output
        compiler_params=pltpu.CompilerParams(
            dimension_semantics=("parallel",),                  # megacore on v7x
        ),
    )(x, folded["w1"], folded["b1"], folded["w_eff"], folded["c_eff"])

    return out_row.reshape(-1)[:B].reshape(B, 1)


def init_params(key, num_inputs):
    """Deterministic init mirroring PyTorch defaults (U(-1/sqrt(fan_in), +...))."""
    def linear(k, fan_in, fan_out):
        kw, kb = jax.random.split(k)
        bound = 1.0 / jnp.sqrt(fan_in)
        # stored as (in, out) so the kernel does x @ W
        w = jax.random.uniform(kw, (fan_in, fan_out), jnp.float32, -bound, bound)
        b = jax.random.uniform(kb, (1, fan_out), jnp.float32, -bound, bound)
        return w, b

    k1, k2, k3 = jax.random.split(key, 3)
    w1, b1 = linear(k1, num_inputs, HID1)
    w2, b2 = linear(k2, HID1, HID2)
    w3, b3 = linear(k3, HID2, 1)
    return {
        "w1": w1, "b1": b1,
        # BatchNorm1d defaults: gamma=1, beta=0, running_mean=0, running_var=1
        "bn_gamma": jnp.ones((1, HID1), jnp.float32),
        "bn_beta": jnp.zeros((1, HID1), jnp.float32),
        "bn_mean": jnp.zeros((1, HID1), jnp.float32),
        "bn_var": jnp.ones((1, HID1), jnp.float32),
        "w2": w2, "b2": b2,
        "w3": w3, "b3": b3,
    }


def _reference_forward(x, p):
    """Unfused pure-JAX reference matching the PyTorch eval-mode forward."""
    h1 = x @ p["w1"] + p["b1"]
    h1 = jnp.maximum(h1, 0.0)
    h1 = (h1 - p["bn_mean"]) / jnp.sqrt(p["bn_var"] + BN_EPS) * p["bn_gamma"] + p["bn_beta"]
    h2 = h1 @ p["w2"] + p["b2"]
    return h2 @ p["w3"] + p["b3"]


if __name__ == "__main__":
    key = jax.random.PRNGKey(0)
    k_param, k_x1, k_x2 = jax.random.split(key, 3)

    num_inputs = 32
    params = init_params(k_param, num_inputs)
    # Perturb BN stats so the fold is non-trivially exercised.
    params["bn_mean"] = 0.05 * jnp.ones((1, HID1), jnp.float32)
    params["bn_var"] = 1.1 * jnp.ones((1, HID1), jnp.float32)
    params["bn_gamma"] = 0.9 * jnp.ones((1, HID1), jnp.float32)
    params["bn_beta"] = 0.01 * jnp.ones((1, HID1), jnp.float32)

    folded = fold_params(params)   # fold once, outside the hot path

    # Small-batch case (single tile, sublane-only padding).
    x_small = jax.random.normal(k_x1, (8, num_inputs), jnp.float32)
    y_small = jax.block_until_ready(neural_network_forward(x_small, folded))
    y_small_ref = _reference_forward(x_small, params)
    assert y_small.shape == (8, 1)
    assert jnp.allclose(y_small, y_small_ref, atol=1e-4, rtol=1e-4), "small-batch mismatch"

    # Larger batch exercising padding + multi-tile grid (2 parallel tiles of 512).
    x_big = jax.random.normal(k_x2, (600, num_inputs), jnp.float32)
    y_big = jax.block_until_ready(neural_network_forward(x_big, folded))
    y_big_ref = _reference_forward(x_big, params)
    assert y_big.shape == (600, 1)
    assert jnp.allclose(y_big, y_big_ref, atol=1e-4, rtol=1e-4), "tiled-batch mismatch"

    print("KERNEL_OK")
</pallas_src>

<mosaic_0001>
module attributes {stable_mosaic.version = 11 : i64} {
  func.func @_mlp_kernel(%arg0: i32, %arg1: memref<8x32xf32, #tpu.memory_space<vmem>>, %arg2: memref<32x128xf32, #tpu.memory_space<vmem>>, %arg3: memref<1x128xf32, #tpu.memory_space<vmem>>, %arg4: memref<1x128xf32, #tpu.memory_space<vmem>>, %arg5: memref<1x1xf32, #tpu.memory_space<smem>>, %arg6: memref<1x8xf32, #tpu.memory_space<vmem>>) attributes {dimension_semantics = [#tpu.dimension_semantics<parallel>], iteration_bounds = array<i64: 1>, scalar_prefetch = 0 : i64, scratch_operands = 0 : i64, tpu.core_type = #tpu.core_type<tc>, window_params = [{transform_indices = @transform_0, window_bounds = array<i64: 8, 32>}, {pipeline_mode = #tpu.pipeline_mode<synchronous>, transform_indices = @transform_1, window_bounds = array<i64: 32, 128>}, {pipeline_mode = #tpu.pipeline_mode<synchronous>, transform_indices = @transform_2, window_bounds = array<i64: 1, 128>}, {pipeline_mode = #tpu.pipeline_mode<synchronous>, transform_indices = @transform_3, window_bounds = array<i64: 1, 128>}, {transform_indices = @transform_4, window_bounds = array<i64: 1, 1>}, {transform_indices = @transform_5, window_bounds = array<i64: 1, 8>}]} {
    %c0 = arith.constant 0 : index
    %c0_0 = arith.constant 0 : index
    %0 = vector.load %arg1[%c0, %c0_0] : memref<8x32xf32, #tpu.memory_space<vmem>>, vector<8x32xf32>
    %c0_1 = arith.constant 0 : index
    %c0_2 = arith.constant 0 : index
    %1 = vector.load %arg2[%c0_1, %c0_2] : memref<32x128xf32, #tpu.memory_space<vmem>>, vector<32x128xf32>
    %cst = arith.constant dense<0.000000e+00> : vector<8x128xf32>
    %2 = tpu.matmul %0, %1, %cst {dimension_numbers = #tpu.dot_dimension_numbers<[1], [0], [0], [1], [0, 0, 1, 1], [], []>} : vector<8x32xf32>, vector<32x128xf32>, vector<8x128xf32> -> vector<8x128xf32>
    %c0_3 = arith.constant 0 : index
    %c0_4 = arith.constant 0 : index
    %3 = vector.load %arg3[%c0_3, %c0_4] : memref<1x128xf32, #tpu.memory_space<vmem>>, vector<1x128xf32>
    %4 = vector.broadcast %3 : vector<1x128xf32> to vector<8x128xf32>
    %5 = arith.addf %2, %4 : vector<8x128xf32>
    %cst_5 = arith.constant 0.000000e+00 : f32
    %6 = vector.broadcast %cst_5 : f32 to vector<8x128xf32>
    %7 = arith.maximumf %5, %6 : vector<8x128xf32>
    %c0_6 = arith.constant 0 : index
    %c0_7 = arith.constant 0 : index
    %8 = vector.load %arg4[%c0_6, %c0_7] : memref<1x128xf32, #tpu.memory_space<vmem>>, vector<1x128xf32>
    %9 = vector.broadcast %8 : vector<1x128xf32> to vector<8x128xf32>
    %10 = arith.mulf %7, %9 : vector<8x128xf32>
    %cst_8 = arith.constant dense<0.000000e+00> : vector<8xf32>
    %11 = vector.multi_reduction <add>, %10, %cst_8 [1] : vector<8x128xf32> to vector<8xf32>
    %c0_9 = arith.constant 0 : index
    %c0_10 = arith.constant 0 : index
    %12 = memref.load %arg5[%c0_9, %c0_10] : memref<1x1xf32, #tpu.memory_space<smem>>
    %13 = vector.broadcast %12 : f32 to vector<8xf32>
    %14 = arith.addf %11, %13 : vector<8xf32>
    %15 = vector.shape_cast %14 : vector<8xf32> to vector<1x8xf32>
    %c0_11 = arith.constant 0 : index
    %c0_12 = arith.constant 0 : index
    %16 = vector.load %arg6[%c0_11, %c0_12] : memref<1x8xf32, #tpu.memory_space<vmem>>, vector<1x8xf32>
    tpu.vector_store %arg6[%c0_11, %c0_12], %15 {strides = array<i32>} : memref<1x8xf32, #tpu.memory_space<vmem>>, vector<1x8xf32>,
    return
  }
  func.func @transform_0(%arg0: i32) -> (i32, i32) {
    %c0_i32 = arith.constant 0 : i32
    %c0_i32_0 = arith.constant 0 : i32
    return %arg0, %c0_i32 : i32, i32
  }
  func.func @transform_1(%arg0: i32) -> (i32, i32) {
    %c0_i32 = arith.constant 0 : i32
    %c0_i32_0 = arith.constant 0 : i32
    %c0_i32_1 = arith.constant 0 : i32
    return %c0_i32, %c0_i32_0 : i32, i32
  }
  func.func @transform_2(%arg0: i32) -> (i32, i32) {
    %c0_i32 = arith.constant 0 : i32
    %c0_i32_0 = arith.constant 0 : i32
    %c0_i32_1 = arith.constant 0 : i32
    return %c0_i32, %c0_i32_0 : i32, i32
  }
  func.func @transform_3(%arg0: i32) -> (i32, i32) {
    %c0_i32 = arith.constant 0 : i32
    %c0_i32_0 = arith.constant 0 : i32
    %c0_i32_1 = arith.constant 0 : i32
    return %c0_i32, %c0_i32_0 : i32, i32
  }
  func.func @transform_4(%arg0: i32) -> (i32, i32) {
    %c0_i32 = arith.constant 0 : i32
    %c0_i32_0 = arith.constant 0 : i32
    %c0_i32_1 = arith.constant 0 : i32
    return %c0_i32, %c0_i32_0 : i32, i32
  }
  func.func @transform_5(%arg0: i32) -> (i32, i32) {
    %c0_i32 = arith.constant 0 : i32
    %c0_i32_0 = arith.constant 0 : i32
    return %c0_i32, %arg0 : i32, i32
  }
}

</mosaic_0001>

<bundles_post_ra>
// kernel: tpu_custom_call.1
= control target key start
LH: loop header
LB: loop body
LE: loop exit
PB: predicated region body
PF: predicated region fallthrough
CT: control target
= control target key end

     0   :  { %11 = vsyncpa [#allocation4], 0  ;;  %s321_s0 = inlined_call_operand.hbm [shape: f32[8,32], index: 0, kind: input, shape index: {}]   ;;  %s322_s1 = inlined_call_operand.hbm [shape: f32[32,128], index: 1, kind: input, shape index: {}]   ;;  %s323_s2 = inlined_call_operand.vmem [shape: f32[1,128], index: 2, kind: input, shape index: {}]   ;;  %s324_s3 = inlined_call_operand.vmem [shape: f32[1,128], index: 3, kind: input, shape index: {}]   ;;  %s325_s4 = inlined_call_operand.<no memory space> [shape: f32[1,1], index: 4, kind: input, shape index: {}]   ;;  %s326_s5 = inlined_call_operand.hbm [shape: f32[1,8], index: 5, kind: output, shape index: {}]  }
   0x1   :  { %12 = vsyncpa [#allocation7], 0 }
   0x2   :  { %13 = vsyncpa [#allocation5], 0  ;;  %s266_s18 = smov [#allocation3]   ;;  %s267_s20 = smov [#allocation6]  }
   0x3   :  { %s20_s19 = sshll.u32 %s266_s18, 4  ;;  %s29_s21 = sshll.u32 %s267_s20, 4  ;;  %s21_s19 = int_to_ptr.vmem [resolvable:$true] %s20_s19  ;;  %s30_s21 = int_to_ptr.vmem [resolvable:$true] %s29_s21 }
   0x4   :  { %s208_s22 = scalar_lea.vmem %s21_s19, 128  ;;  %p213_p1 = scmp.lt.s32.totalorder %s21_s19, %s21_s19 }
   0x5   :  { %p209_p0 = scmp.ne.s32.totalorder %s21_s19, %s208_s22  ;;  %p214_p2 = scmp.lt.s32.totalorder %s208_s22, %s208_s22 }
   0x7   :  { %p215_p3 = por %p214_p2, %p213_p1 }
   0x9   :  { %p216_p4 = pnand %p215_p3, %p209_p0 }
   0xb   :  { %219 = shalt.err (!%p216_p4)
}
   0xc   :  { %23 = dma.hbm_to_vmem [thread:$0]  %s321_s0, 128, %s21_s19, [#allocation4]  }
   0xd   :  { %s228_s25 = scalar_lea.vmem %s30_s21, 512  ;;  %p233_p6 = scmp.lt.s32.totalorder %s30_s21, %s30_s21 }
   0xe   :  { %p229_p5 = scmp.ne.s32.totalorder %s30_s21, %s228_s25  ;;  %p234_p7 = scmp.lt.s32.totalorder %s228_s25, %s228_s25 }
  0x10   :  { %p235_p8 = por %p234_p7, %p233_p6 }
  0x12   :  { %p236_p9 = pnand %p235_p8, %p229_p5 }
  0x14   :  { %239 = shalt.err (!%p236_p9)
}
  0x15   :  { %s268_s26 = smov 128   ;;  %s269_s27 = smov 8  }
  0x16   :  { %35 = dma.hbm_to_vmem [thread:$0]  %s322_s1, 512, %s30_s21, [#allocation7], %s268_s26, %s268_s26, %s269_s27  }
  0x17   :  { %260 = dma.done.wait [#allocation4], 128  }
  0x18   :  { %261 = vsyncadd [#allocation4], 4294967168 }
  0x19   :  { %262 = dma.done.wait [#allocation7], 512  }
  0x1a   :  { %263 = vsyncadd [#allocation7], 4294966784  ;;  %v270_v0 = vmov 0.0   ;;  %vm271_vm0 = vmmov 0   ;;  %v52_v1 = vld [vmem:[#allocation6 + $0x18] sm:$0xff]  ;;  %v51_v2 = vld [vmem:[#allocation6 + $0x10] sm:$0xff]  ;;  %v149_v13 = vlaneseq  ;;  %v146_v16 = vstv %s325_s4 }
  0x1b   :  { %182 = vmatprep.subr.mxu0 %v270_v0  ;;  %190 = vmatprep.mubr.msk.f32.mxu0 %vm271_vm0, %v270_v0  ;;  %v50_v3 = vld [vmem:[#allocation6 + $0x8] sm:$0xff]  ;;  %v49_v4 = vld [vmem:[#allocation6] sm:$0xff]  ;;  %v48_v5 = vld [vmem:[#allocation3] sm:$0xff]  ;;  %vm60_vm1 = vcmask 261120   ;;  %vm156_vm2 = vcmask 57344  }
  0x1c   :  { %183 = vmatpush3.msra.mxu0 %v52_v1  ;;  %v174_v6 = vld [vmem:[%s323_s2] ss:$0 sm:$0xff]  ;;  %v150_v14 = vand.u32 127, %v149_v13  ;;  %v152_v15 = vshrl.u32 %v149_v13, 7  ;;  %s272_s2 = smov [#allocation8]  }
  0x1d   :  { %184 = vmatprep.subr.mxu0 %v270_v0  ;;  %v176_v10 = vld [vmem:[%s324_s3] ss:$0 sm:$0xff]  ;;  %s164_s9 = sshll.u32 %s272_s2, 4  ;;  %s165_s9 = int_to_ptr.vmem [resolvable:$true] %s164_s9 }
  0x1e   :  { %185 = vmatpush3.msra.mxu0 %v51_v2  ;;  %v153_v17 = vsub.s32 %v150_v14, %v152_v15  ;;  %s240_s3 = scalar_lea.vmem %s165_s9, 16  ;;  %s244_s10 = scalar_lea.vmem %s165_s9, 32 }
  0x1f   :  { %186 = vmatprep.subr.mxu0 %v270_v0  ;;  %p241_p10 = scmp.ne.s32.totalorder %s165_s9, %s240_s3  ;;  %p245_p11 = scmp.lt.s32.totalorder %s165_s9, %s165_s9 }
  0x20   :  { %187 = vmatpush3.msra.mxu0 %v50_v3  ;;  %p246_p12 = scmp.lt.s32.totalorder %s244_s10, %s240_s3 }
  0x21   :  { %188 = vmatprep.subr.mxu0 %v270_v0 }
  0x22   :  { %189 = vmatpush3.msra.mxu0 %v49_v4  ;;  %p247_p13 = por %p246_p12, %p245_p11 }
  0x23   :  { %191 = vmatmul.mubr.msk.f32.vlgmr.msra.gmra.mxu0 %vm60_vm1, %v48_v5 }
  0x24   :  { %p248_p0 = pnand %p247_p13, %p241_p10 }
  0xe3   :  { %v130_v7 = vpop.f32.mrf.mxu0 }
  0xe4   :  { %v131_v8 = vadd.f32 %v174_v6, %v130_v7 }
  0xe5   :  { %v192_v9 = vpop.f32.mrf.mxu0 }
  0xe6   :  { %v134_v11 = vmax.f32 %v131_v8, 0.0 }
  0xe8   :  { %v142_v12 = vmul.f32 %v176_v10, %v134_v11 }
  0xea   :  { %143 = vadd.xlane.f32.xlu0 %v142_v12 }
 0x173   :  { %v144_v18 = vpop.xlane.xlu0 %143 }
 0x174   :  { %v147_v19 = vadd.f32 %v146_v16, %v144_v18 }
 0x176   :  { %v154_v20 = vrot.slane %v147_v19, %v153_v17 }
 0x178   :  { %157 = vst.msk [vmem:[#allocation8] sm:$0x1] %vm156_vm2, %v154_v20 }
 0x179   :  { %251 = shalt.err (!%p248_p0)
}
 0x17a   :  { %167 = dma.vmem_to_hbm [thread:$0]  %s165_s9, 16, %s326_s5, [#allocation5]  }
 0x17b   :  { %264 = dma.done.wait [#allocation5], 16  }
 0x17c   :  { %265 = vsyncadd [#allocation5], 4294967280 }
 0x17d   :  { %171 = vsyncpa [#allocation4], 1 }
 0x17e   :  { %172 = vsyncpa [#allocation7], 1 }
 0x17f   :  { %173 = vsyncpa [#allocation5], 1 }

</bundles_post_ra>
